<compile_context>
chip_gen: v7x
topology: tpu7x:2x2x1
jax: 0.10.0
libtpu: 0.0.40
codegen_flags: <defaults>
</compile_context>

<pallas_src>
import functools

import jax
import jax.numpy as jnp
from jax import lax
from jax.experimental import pallas as pl
from jax.experimental.pallas import tpu as pltpu

_MIB = 1024 * 1024


def _channel_attention_kernel(x_ref, w1_ref, w2_ref, o_ref, sum_acc, max_acc,
                              *, hw_total, hw_tile, mask_needed):
    # x_ref : (b_tile, C, hw_tile)   w1_ref : (C, Cr)   w2_ref : (Cr, C)
    # o_ref : (b_tile, 1, C)         sum_acc/max_acc : (b_tile, C) f32 scratch
    k = pl.program_id(1)
    last_k = pl.num_programs(1) - 1

    @pl.when(k == 0)
    def _init():
        sum_acc[...] = jnp.zeros_like(sum_acc)
        max_acc[...] = jnp.full_like(max_acc, -jnp.inf)

    def _accumulate(masked):
        x = x_ref[...]                 # keep input dtype; accumulate in f32
        if masked:
            # Mask the padded tail of the last partial HW tile only.
            idx = k * hw_tile + lax.broadcasted_iota(jnp.int32, x.shape, 2)
            valid = idx < hw_total
            x_sum = jnp.where(valid, x, jnp.zeros((), x.dtype))
            x_max = jnp.where(valid, x, jnp.array(-jnp.inf, x.dtype))
        else:
            x_sum = x
            x_max = x
        sum_acc[...] += jnp.sum(x_sum, axis=-1, dtype=jnp.float32)
        max_acc[...] = jnp.maximum(
            max_acc[...], jnp.max(x_max, axis=-1).astype(jnp.float32))

    if mask_needed:
        # Steady-state tiles stay mask-free; only the final tile pays for the
        # iota/compare/where work.
        @pl.when(k != last_k)
        def _steady():
            _accumulate(masked=False)

        @pl.when(k == last_k)
        def _tail():
            _accumulate(masked=True)
    else:
        _accumulate(masked=False)

    @pl.when(k == last_k)
    def _epilogue():
        inv_hw = jnp.float32(1.0 / hw_total)            # divide by true H*W
        avg_pool = sum_acc[...] * inv_hw                # (b_tile, C) f32
        max_pool = max_acc[...]                         # (b_tile, C) f32

        w1 = w1_ref[...].astype(jnp.float32)            # (C, Cr)
        w2 = w2_ref[...].astype(jnp.float32)            # (Cr, C)

        # Two dots sharing the weights (identical MXU cost at these tiny
        # shapes; avoids a sublane-axis concat relayout).
        h_avg = jnp.maximum(
            jnp.dot(avg_pool, w1, preferred_element_type=jnp.float32), 0.0)
        h_max = jnp.maximum(
            jnp.dot(max_pool, w1, preferred_element_type=jnp.float32), 0.0)
        out = (jnp.dot(h_avg, w2, preferred_element_type=jnp.float32)
               + jnp.dot(h_max, w2, preferred_element_type=jnp.float32))

        gate = jax.nn.sigmoid(out)                      # (b_tile, C)
        o_ref[...] = gate[:, None, :].astype(o_ref.dtype)


def _vmem_capacity_bytes():
    try:
        return int(pltpu.get_tpu_info().vmem_capacity_bytes)
    except Exception:
        return 64 * _MIB          # conservative fallback: v7x per-TC VMEM


def _x_block_budget_bytes():
    cap = _vmem_capacity_bytes()
    # ~40% of physical VMEM for the streamed x blocks (~25 MiB on v7x,
    # 48 MiB on v5e/v6e), leaving room for weights/output/scratch/internals.
    return min(48 * _MIB, max(16 * _MIB, (2 * cap) // 5))


def _pick_b_tile(B):
    # Prefer a sublane-aligned tile of 8, but keep the "parallel" batch grid
    # axis at >= 2 iterations whenever B >= 2 (v7x has 2 TensorCores), and
    # never fall back to b_tile = B for large non-multiple-of-8 batches.
    if B % 8 == 0 and B >= 16:
        return 8                               # grid[0] = B // 8 >= 2
    if B >= 2:
        cap = min(8, B // 2)                   # guarantees grid[0] >= 2
        for d in range(cap, 0, -1):
            if B % d == 0:
                return d
    return B                                   # B == 1


def _pick_hw_tile(HW, C, b_tile, itemsize, budget, hw_tile):
    """Returns (hw_tile, n_buffers)."""
    row_bytes = b_tile * C * itemsize          # bytes per lane of one x block

    if hw_tile is not None:                    # user override: validate/round
        if hw_tile >= HW:
            return HW, 2
        hw_tile = max(128, (int(hw_tile) // 128) * 128)   # lane-dense
        return hw_tile, (3 if hw_tile <= 512 else 2)

    max_hw = (budget // 2) // row_bytes        # double-buffered by default
    if HW <= max_hw:
        return HW, 2                           # one full-extent block
    tile = max(128, (max_hw // 128) * 128)
    if tile <= 512:
        # Budget-forced small tiles: deepen the pipeline to hide DMA latency,
        # rebalancing the same budget across 3 buffers.
        tile = max(128, (((budget // 3) // row_bytes) // 128) * 128)
        return tile, 3
    return tile, 2


def channel_attention(x, w_fc1, w_fc2, *, hw_tile=None):
    """x: (B, C, H, W) NCHW.  w_fc1: (Cr, C) [conv1 1x1].  w_fc2: (C, Cr) [conv2 1x1]."""
    B, C, H, W = x.shape
    assert jnp.issubdtype(x.dtype, jnp.floating), (
        "max-pool -inf fill requires a floating-point input dtype")
    Cr = w_fc1.shape[0]
    HW = H * W
    x_flat = x.reshape(B, C, HW)

    # Pre-transpose conv weights so the kernel does row-vector matmuls:
    #   (b, C) @ (C, Cr) -> relu -> (b, Cr) @ (Cr, C)
    w1_t = jnp.transpose(w_fc1)                # (C, Cr)
    w2_t = jnp.transpose(w_fc2)                # (Cr, C)

    itemsize = x.dtype.itemsize
    b_tile = _pick_b_tile(B)
    budget = _x_block_budget_bytes()
    hw_tile, n_buf = _pick_hw_tile(HW, C, b_tile, itemsize, budget, hw_tile)

    grid = (B // b_tile, pl.cdiv(HW, hw_tile))
    mask_needed = (HW % hw_tile) != 0

    kernel = functools.partial(
        _channel_attention_kernel,
        hw_total=HW, hw_tile=hw_tile, mask_needed=mask_needed)

    def _x_index_map(i, k):
        return (i, 0, k)

    x_spec = pl.BlockSpec((b_tile, C, hw_tile), _x_index_map)
    if n_buf != 2:
        try:
            x_spec = pl.BlockSpec((b_tile, C, hw_tile), _x_index_map,
                                  pipeline_mode=pl.Buffered(n_buf))
        except TypeError:
            # Older BlockSpec without pipeline_mode: fall back to the default
            # double buffering (correctness unaffected).
            x_spec = pl.BlockSpec((b_tile, C, hw_tile), _x_index_map)
            n_buf = 2

    # Explicit scoped-VMEM limit: streamed x buffers plus generous headroom
    # for weights/output/scratch and Mosaic internals (v5e's default scoped
    # limit is only 16 MiB, so it must be raised there).
    x_bytes = n_buf * b_tile * C * hw_tile * itemsize
    vmem_limit = int(max(32 * _MIB, x_bytes + 16 * _MIB))

    cost = pl.CostEstimate(
        flops=2 * B * C * HW + 8 * B * C * Cr,   # pooling reduce + tiny FCs
        transcendentals=B * C,                   # sigmoid
        bytes_accessed=(x_flat.size * itemsize
                        + (w1_t.size + w2_t.size) * w1_t.dtype.itemsize
                        + B * C * itemsize),
    )

    out = pl.pallas_call(
        kernel,
        out_shape=jax.ShapeDtypeStruct((B, 1, C), x.dtype),
        grid_spec=pltpu.PrefetchScalarGridSpec(
            num_scalar_prefetch=0,
            grid=grid,
            in_specs=[
                x_spec,
                pl.BlockSpec((C, Cr), lambda i, k: (0, 0)),
                pl.BlockSpec((Cr, C), lambda i, k: (0, 0)),
            ],
            out_specs=pl.BlockSpec((b_tile, 1, C), lambda i, k: (i, 0, 0)),
            scratch_shapes=[
                pltpu.VMEM((b_tile, C), jnp.float32),   # running sum
                pltpu.VMEM((b_tile, C), jnp.float32),   # running max
            ],
        ),
        compiler_params=pltpu.CompilerParams(
            dimension_semantics=("parallel", "arbitrary"),
            vmem_limit_bytes=vmem_limit),
        cost_estimate=cost,
    )(x_flat, w1_t, w2_t)

    return out.reshape(B, C, 1, 1)


def reference_channel_attention(x, w_fc1, w_fc2):
    """Pure-JAX reference matching the PyTorch module semantics."""
    avg_p = jnp.mean(x, axis=(2, 3))  # (B, C)
    max_p = jnp.max(x, axis=(2, 3))   # (B, C)

    def fc(p):
        h = jnp.maximum(p @ w_fc1.T, 0.0)
        return h @ w_fc2.T

    out = jax.nn.sigmoid(fc(avg_p) + fc(max_p))
    return out[:, :, None, None]


if __name__ == "__main__":
    ratio = 16
    key = jax.random.PRNGKey(0)
    kx, k1, k2, kx2 = jax.random.split(key, 4)

    # Case 1: small shape, single full-extent HW block, grid[0] = 2 (b_tile=1).
    B, C, H, W = 2, 32, 16, 16
    Cr = C // ratio
    x = jax.random.normal(kx, (B, C, H, W), dtype=jnp.float32)
    # Conv2d(in_planes, in_planes//ratio, 1, bias=False).weight -> (Cr, C, 1, 1) squeezed
    w_fc1 = jax.random.normal(k1, (Cr, C), dtype=jnp.float32) * 0.1
    # Conv2d(in_planes//ratio, in_planes, 1, bias=False).weight -> (C, Cr, 1, 1) squeezed
    w_fc2 = jax.random.normal(k2, (C, Cr), dtype=jnp.float32) * 0.1

    out = jax.block_until_ready(channel_attention(x, w_fc1, w_fc2))
    ref = reference_channel_attention(x, w_fc1, w_fc2)
    assert out.shape == (B, C, 1, 1), out.shape
    assert jnp.allclose(out, ref, atol=1e-5, rtol=1e-5), float(
        jnp.max(jnp.abs(out - ref)))

    # Case 2: force a small HW tile so the streaming reduction, last-tile-only
    # masking, and triple-buffered input path (HW = 17*17 = 289, tiles of 128)
    # are exercised.
    H2, W2 = 17, 17
    x2 = jax.random.normal(kx2, (B, C, H2, W2), dtype=jnp.float32)
    out2 = jax.block_until_ready(channel_attention(x2, w_fc1, w_fc2, hw_tile=128))
    ref2 = reference_channel_attention(x2, w_fc1, w_fc2)
    assert out2.shape == (B, C, 1, 1), out2.shape
    assert jnp.allclose(out2, ref2, atol=1e-5, rtol=1e-5), float(
        jnp.max(jnp.abs(out2 - ref2)))

    print("KERNEL_OK")
</pallas_src>

<mosaic_0001>
module attributes {stable_mosaic.version = 11 : i64} {
  func.func @_channel_attention_kernel(%arg0: i32, %arg1: i32, %arg2: memref<1x32x256xf32, #tpu.memory_space<vmem>>, %arg3: memref<32x2xf32, #tpu.memory_space<vmem>>, %arg4: memref<2x32xf32, #tpu.memory_space<vmem>>, %arg5: memref<1x1x32xf32, #tpu.memory_space<vmem>>, %arg6: memref<1x32xf32, #tpu.memory_space<vmem>>, %arg7: memref<1x32xf32, #tpu.memory_space<vmem>>) attributes {dimension_semantics = [#tpu.dimension_semantics<parallel>, #tpu.dimension_semantics<arbitrary>], iteration_bounds = array<i64: 2, 1>, scalar_prefetch = 0 : i64, scratch_operands = 2 : i64, tpu.core_type = #tpu.core_type<tc>, window_params = [{transform_indices = @transform_0, window_bounds = array<i64: 1, 32, 256>}, {pipeline_mode = #tpu.pipeline_mode<synchronous>, transform_indices = @transform_1, window_bounds = array<i64: 32, 2>}, {pipeline_mode = #tpu.pipeline_mode<synchronous>, transform_indices = @transform_2, window_bounds = array<i64: 2, 32>}, {transform_indices = @transform_3, window_bounds = array<i64: 1, 1, 32>}]} {
    %c0_i32 = arith.constant 0 : i32
    %0 = arith.cmpi eq, %arg1, %c0_i32 : i32
    %1 = arith.extui %0 : i1 to i32
    %c0_i32_0 = arith.constant 0 : i32
    %2 = arith.cmpi ne, %1, %c0_i32_0 : i32
    scf.if %2 {
      %cst_14 = arith.constant 0.000000e+00 : f32
      %15 = vector.broadcast %cst_14 : f32 to vector<1x32xf32>
      %c0_15 = arith.constant 0 : index
      %c0_16 = arith.constant 0 : index
      %16 = vector.load %arg6[%c0_15, %c0_16] : memref<1x32xf32, #tpu.memory_space<vmem>>, vector<1x32xf32>
      tpu.vector_store %arg6[%c0_15, %c0_16], %15 {strides = array<i32>} : memref<1x32xf32, #tpu.memory_space<vmem>>, vector<1x32xf32>,
      %cst_17 = arith.constant 0xFF800000 : f32
      %17 = vector.broadcast %cst_17 : f32 to vector<1x32xf32>
      %c0_18 = arith.constant 0 : index
      %c0_19 = arith.constant 0 : index
      %18 = vector.load %arg7[%c0_18, %c0_19] : memref<1x32xf32, #tpu.memory_space<vmem>>, vector<1x32xf32>
      tpu.vector_store %arg7[%c0_18, %c0_19], %17 {strides = array<i32>} : memref<1x32xf32, #tpu.memory_space<vmem>>, vector<1x32xf32>,
    } else {
    }
    %c0 = arith.constant 0 : index
    %c0_1 = arith.constant 0 : index
    %c0_2 = arith.constant 0 : index
    %3 = vector.load %arg2[%c0, %c0_1, %c0_2] : memref<1x32x256xf32, #tpu.memory_space<vmem>>, vector<1x32x256xf32>
    %c0_3 = arith.constant 0 : index
    %c0_4 = arith.constant 0 : index
    %4 = vector.load %arg6[%c0_3, %c0_4] : memref<1x32xf32, #tpu.memory_space<vmem>>, vector<1x32xf32>
    %cst = arith.constant dense<0.000000e+00> : vector<1x32xf32>
    %5 = vector.multi_reduction <add>, %3, %cst [2] : vector<1x32x256xf32> to vector<1x32xf32>
    %6 = arith.addf %4, %5 : vector<1x32xf32>
    %c0_5 = arith.constant 0 : index
    %c0_6 = arith.constant 0 : index
    %7 = vector.load %arg6[%c0_5, %c0_6] : memref<1x32xf32, #tpu.memory_space<vmem>>, vector<1x32xf32>
    tpu.vector_store %arg6[%c0_5, %c0_6], %6 {strides = array<i32>} : memref<1x32xf32, #tpu.memory_space<vmem>>, vector<1x32xf32>,
    %c0_7 = arith.constant 0 : index
    %c0_8 = arith.constant 0 : index
    %8 = vector.load %arg7[%c0_7, %c0_8] : memref<1x32xf32, #tpu.memory_space<vmem>>, vector<1x32xf32>
    %cst_9 = arith.constant dense<0xFF800000> : vector<1x32xf32>
    %9 = vector.multi_reduction <maximumf>, %3, %cst_9 [2] : vector<1x32x256xf32> to vector<1x32xf32>
    %10 = arith.maximumf %8, %9 : vector<1x32xf32>
    %c0_10 = arith.constant 0 : index
    %c0_11 = arith.constant 0 : index
    %11 = vector.load %arg7[%c0_10, %c0_11] : memref<1x32xf32, #tpu.memory_space<vmem>>, vector<1x32xf32>
    tpu.vector_store %arg7[%c0_10, %c0_11], %10 {strides = array<i32>} : memref<1x32xf32, #tpu.memory_space<vmem>>, vector<1x32xf32>,
    %c0_i32_12 = arith.constant 0 : i32
    %12 = arith.cmpi eq, %arg1, %c0_i32_12 : i32
    %13 = arith.extui %12 : i1 to i32
    %c0_i32_13 = arith.constant 0 : i32
    %14 = arith.cmpi ne, %13, %c0_i32_13 : i32
    scf.if %14 {
      %c0_14 = arith.constant 0 : index
      %c0_15 = arith.constant 0 : index
      %15 = vector.load %arg6[%c0_14, %c0_15] : memref<1x32xf32, #tpu.memory_space<vmem>>, vector<1x32xf32>
      %cst_16 = arith.constant 3.906250e-03 : f32
      %16 = vector.broadcast %cst_16 : f32 to vector<1x32xf32>
      %17 = arith.mulf %15, %16 : vector<1x32xf32>
      %c0_17 = arith.constant 0 : index
      %c0_18 = arith.constant 0 : index
      %18 = vector.load %arg7[%c0_17, %c0_18] : memref<1x32xf32, #tpu.memory_space<vmem>>, vector<1x32xf32>
      %c0_19 = arith.constant 0 : index
      %c0_20 = arith.constant 0 : index
      %19 = vector.load %arg3[%c0_19, %c0_20] : memref<32x2xf32, #tpu.memory_space<vmem>>, vector<32x2xf32>
      %c0_21 = arith.constant 0 : index
      %c0_22 = arith.constant 0 : index
      %20 = vector.load %arg4[%c0_21, %c0_22] : memref<2x32xf32, #tpu.memory_space<vmem>>, vector<2x32xf32>
      %cst_23 = arith.constant dense<0.000000e+00> : vector<1x2xf32>
      %21 = tpu.matmul %17, %19, %cst_23 {dimension_numbers = #tpu.dot_dimension_numbers<[1], [0], [0], [1], [0, 0, 1, 1], [], []>} : vector<1x32xf32>, vector<32x2xf32>, vector<1x2xf32> -> vector<1x2xf32>
      %cst_24 = arith.constant 0.000000e+00 : f32
      %22 = vector.broadcast %cst_24 : f32 to vector<1x2xf32>
      %23 = arith.maximumf %21, %22 : vector<1x2xf32>
      %cst_25 = arith.constant dense<0.000000e+00> : vector<1x2xf32>
      %24 = tpu.matmul %18, %19, %cst_25 {dimension_numbers = #tpu.dot_dimension_numbers<[1], [0], [0], [1], [0, 0, 1, 1], [], []>} : vector<1x32xf32>, vector<32x2xf32>, vector<1x2xf32> -> vector<1x2xf32>
      %cst_26 = arith.constant 0.000000e+00 : f32
      %25 = vector.broadcast %cst_26 : f32 to vector<1x2xf32>
      %26 = arith.maximumf %24, %25 : vector<1x2xf32>
      %cst_27 = arith.constant dense<0.000000e+00> : vector<1x32xf32>
      %27 = tpu.matmul %23, %20, %cst_27 {dimension_numbers = #tpu.dot_dimension_numbers<[1], [0], [0], [1], [0, 0, 1, 1], [], []>} : vector<1x2xf32>, vector<2x32xf32>, vector<1x32xf32> -> vector<1x32xf32>
      %cst_28 = arith.constant dense<0.000000e+00> : vector<1x32xf32>
      %28 = tpu.matmul %26, %20, %cst_28 {dimension_numbers = #tpu.dot_dimension_numbers<[1], [0], [0], [1], [0, 0, 1, 1], [], []>} : vector<1x2xf32>, vector<2x32xf32>, vector<1x32xf32> -> vector<1x32xf32>
      %29 = arith.addf %27, %28 : vector<1x32xf32>
      %30 = arith.negf %29 : vector<1x32xf32>
      %31 = math.exp %30 : vector<1x32xf32>
      %cst_29 = arith.constant 1.000000e+00 : f32
      %32 = vector.broadcast %cst_29 : f32 to vector<1x32xf32>
      %33 = arith.addf %32, %31 : vector<1x32xf32>
      %34 = arith.divf %32, %33 : vector<1x32xf32>
      %35 = vector.shape_cast %34 : vector<1x32xf32> to vector<1x1x32xf32>
      %c0_30 = arith.constant 0 : index
      %c0_31 = arith.constant 0 : index
      %c0_32 = arith.constant 0 : index
      %36 = vector.load %arg5[%c0_30, %c0_31, %c0_32] : memref<1x1x32xf32, #tpu.memory_space<vmem>>, vector<1x1x32xf32>
      tpu.vector_store %arg5[%c0_30, %c0_31, %c0_32], %35 {strides = array<i32>} : memref<1x1x32xf32, #tpu.memory_space<vmem>>, vector<1x1x32xf32>,
    } else {
    }
    return
  }
  func.func @transform_0(%arg0: i32, %arg1: i32) -> (i32, i32, i32) {
    %c0_i32 = arith.constant 0 : i32
    %c0_i32_0 = arith.constant 0 : i32
    return %arg0, %c0_i32, %arg1 : i32, i32, i32
  }
  func.func @transform_1(%arg0: i32, %arg1: i32) -> (i32, i32) {
    %c0_i32 = arith.constant 0 : i32
    %c0_i32_0 = arith.constant 0 : i32
    %c0_i32_1 = arith.constant 0 : i32
    return %c0_i32, %c0_i32_0 : i32, i32
  }
  func.func @transform_2(%arg0: i32, %arg1: i32) -> (i32, i32) {
    %c0_i32 = arith.constant 0 : i32
    %c0_i32_0 = arith.constant 0 : i32
    %c0_i32_1 = arith.constant 0 : i32
    return %c0_i32, %c0_i32_0 : i32, i32
  }
  func.func @transform_3(%arg0: i32, %arg1: i32) -> (i32, i32, i32) {
    %c0_i32 = arith.constant 0 : i32
    %c0_i32_0 = arith.constant 0 : i32
    %c0_i32_1 = arith.constant 0 : i32
    return %arg0, %c0_i32, %c0_i32_0 : i32, i32, i32
  }
}

</mosaic_0001>

<bundles_post_ra>
// kernel: tpu_custom_call.1
= control target key start
LH: loop header
LB: loop body
LE: loop exit
PB: predicated region body
PF: predicated region fallthrough
CT: control target
= control target key end

     0   :  { %8 = vsyncpa [#allocation5], 0  ;;  %s2078_s0 = inlined_call_operand.hbm [shape: f32[2,32,256], index: 0, kind: input, shape index: {}]   ;;  %s2079_s1 = inlined_call_operand.vmem [shape: f32[32,2], index: 1, kind: input, shape index: {}]   ;;  %s2080_s2 = inlined_call_operand.vmem [shape: f32[2,32], index: 2, kind: input, shape index: {}]   ;;  %s2081_s3 = inlined_call_operand.hbm [shape: f32[2,1,32], index: 3, kind: output, shape index: {}]  }
   0x1   :  { %10 = vsyncpa [#allocation5 + $0x1], 0 }
   0x2   :  { %11 = vsyncpa [#allocation6], 0 }
   0x3   :  { %13 = vsyncpa [#allocation6 + $0x1], 0  ;;  %s1714_s12 = smov 0   ;;  %s1716_s13 = smov 0  }
   0x4   :  { %s1718_s14 = smov 0   ;;  %s1720_s15 = smov 0  }
   0x5   :  { %s1722_s16 = smov 0   ;;  %s1724_s17 = smov 0  }
   0x6 LB: > { %s1415_s18 = sadd.s32 4294967295, %s1682_s17   ;;  %s1416_s19 = sadd.s32 4294967294, %s1682_s17   ;;  %s1682_s17 = sphi %s1724_s17, %s19_s17   ;;  %s1678_s16 = sphi %s1722_s16, %s2096_s16   ;;  %s1674_s15 = sphi %s1720_s15, %s2095_s15   ;;  %s1670_s14 = sphi %s1718_s14, %s2094_s14   ;;  %s1666_s13 = sphi %s1716_s13, %s2093_s13   ;;  %s1662_s12 = sphi %s1714_s12, %s2092_s12  }
   0x7   : > { %s31_s20 = sadd.s32 1, %s1678_s16  ;;  %s40_s21 = sadd.s32 1, %s1670_s14 }
   0x8   : > { %p33_p0 = scmp.ge.s32.totalorder %s31_s20, 2  ;;  %p47_p1 = scmp.ne.s32.totalorder %s1670_s14, %s1666_s13 }
   0x9   : > { %p48_p2 = scmp.eq.s32.totalorder %s1682_s17, 0  ;;  %p53_p3 = scmp.ne.s32.totalorder %s1666_s13, %s1662_s12 }
   0xa   : > { %s2098_s20 = smov (%p33_p0, %s31_s20), 0  ;;  %p54_p5 = scmp.eq.s32.totalorder %s1415_s18, 0 }
   0xb   : > { %p1755_p4 = por %p48_p2, %p47_p1  ;;  %s35_s23 = ssub.s32 %s1678_s16, %s2098_s20 }
   0xc   : > { %p119_p6 = scmp.eq.s32.totalorder %s1415_s18, 1  ;;  %p38_p7 = scmp.eq.s32.totalorder %s35_s23, 0 }
   0xd   : > { %p1761_p8 = por %p54_p5, %p53_p3  ;;  %p125_p10 = scmp.eq.s32.totalorder %s1416_s19, 1 }
   0xe   : > { %p1765_p9 = por %p119_p6, %p47_p1  ;;  %p1506_p13 = scmp.lt.s32.totalorder %s1682_s17, 2 }
   0xf   : > { %s1770_s26 = scalar_select %p38_p7, %s1670_s14, %s40_s21  }
  0x10   : > { %s2085_s25 = scalar_select %p1765_p9, 1, 0 }
  0x11   : > { %p1772_p11 = por %p125_p10, %p53_p3  ;;  %s151_s28 = sand.u32 1, %s1670_s14  }
  0x12   : > { %s1419_s29 = sshll.u32 %s151_s28, 6  ;;  %s1434_s30 = sshll.u32 %s1678_s16, 10 }
  0x13   : > { %s2086_s27 = scalar_select %p1772_p11, 1, 0 }
  0x14   : > { %s1783_s6 = scalar_lea.hbm %s2078_s0, %s1434_s30  ;;  %s155_s7 = scalar_lea.vmem [#allocation4], %s1419_s29 }
  0x15   : > { %s164_s8 = sshll.u32 %s155_s7, 4  ;;  %p1789_p0 = pnand %p1506_p13, %p1755_p4  ;;  %s1785_s8 = int_to_ptr.vmem [resolvable:$true] %s164_s8 }
  0x16   : > { %s1794_s10 = scalar_lea.sflag [#allocation5], %s151_s28  ;;  %s1570_s11 = scalar_lea.hbm %s1783_s6, 1024 }
  0x17   : > { %p1571_p2 = scmp.ne.s32.totalorder %s1783_s6, %s1570_s11  ;;  %p1572_p3 = pneg %p1789_p0 }
  0x18   : > { %s1575_s21 = scalar_lea.hbm %s2078_s0, 2048  ;;  %p1576_p4 = scmp.lt.u32.totalorder %s1783_s6, %s2078_s0 }
  0x19   : > { %p1573_p5 = pnand %p1572_p3, %p1571_p2  ;;  %p1577_p7 = scmp.lt.u32.totalorder %s1575_s21, %s1570_s11 }
  0x1a   : > { %p1579_p13 = scmp.lt.u32.totalorder %s1570_s11, %s1783_s6 }
  0x1b   : > { %p1574_p6 = pneg %p1573_p5  ;;  %p1578_p10 = por %p1577_p7, %p1576_p4 }
  0x1d   : > { %p1580_p12 = por %p1579_p13, %p1578_p10 }
  0x1f   : > { %p1581_p1 = pnand %p1580_p12, %p1574_p6 }
  0x21   : > { %1584 = shalt.err (!%p1581_p1)
}
  0x22   : > { %s1585_s28 = scalar_lea.vmem %s1785_s8, 1024  ;;  %s1684_s29 = smov [#allocation4]  }
  0x23   : > { %p1586_p2 = scmp.ne.s32.totalorder %s1785_s8, %s1585_s28  ;;  %s1590_s30 = sshll.u32 %s1684_s29, 4  ;;  %s1591_s30 = int_to_ptr.vmem [resolvable:$false] %s1590_s30 }
  0x24   : > { %s1592_s4 = scalar_lea.vmem %s1591_s30, 2048  ;;  %p1593_p9 = scmp.lt.s32.totalorder %s1785_s8, %s1591_s30 }
  0x25   : > { %p1588_p5 = pnand %p1586_p2, %p1572_p3  ;;  %p1594_p4 = scmp.lt.s32.totalorder %s1592_s4, %s1585_s28 }
  0x27   : > { %p1589_p11 = pneg %p1588_p5  ;;  %p1595_p7 = por %p1594_p4, %p1593_p9 }
  0x29   : > { %p1596_p10 = pnand %p1595_p7, %p1589_p11 }
  0x2b   : > { %1599 = shalt.err (!%p1596_p10)
}
  0x2c   : > { %s1685_s5 = smov 256   ;;  %s1686_s7 = smov 16  }
  0x2d   : > { %1501 = dma.hbm_to_vmem [thread:$0]  (!%p1789_p0), %s1783_s6, 1024, %s1785_s8, %s1794_s10, %s1685_s5, %s1685_s5, %s1686_s7  }
  0x2e   : > { %p172_p12 = scmp.lt.s32.totalorder %s1682_s17, 3  ;;  %p2088_p1 = scmp.ge.s32.totalorder %s1682_s17, 1 }
  0x30   : > { %p173_p3 = pnand %p2088_p1, %p172_p12 }
  0x31   : > { %s1826_s11 = sand.u32 (!%p173_p3), 1, %s1666_s13  }
  0x32   : > { %176 = sbr.rel (%p173_p3) target bundleno = 865 (0x361), region = 32  ;;  %s1423_s18 = sshll.u32 (!%p173_p3), %s1826_s11, 6 }
  0x33   : > { %s179_s19 = scalar_lea.sflag (!%p173_p3), [#allocation5], %s1826_s11  ;;  %s182_s21 = scalar_lea.vmem (!%p173_p3), [#allocation4], %s1423_s18 }
  0x39   : > { %1653 = dma.done.wait (%p1761_p8), %s179_s19, 1024  }
  0x3a   : > { %1655 = vsyncadd (%p1761_p8), %s179_s19, 4294966272  ;;  %v212_v0 = vld [vmem:[%s182_s21] sm:$0xff]  ;;  %v213_v1 = vld [vmem:[%s182_s21 + $0x8] sm:$0xff]  ;;  %v1687_v16 = vmov 0   ;;  %v237_v17 = vlaneseq  ;;  %v1688_v18 = vmov 1966171168  }
  0x3b   : > { %v214_v2 = vld [vmem:[%s182_s21 + $0x10] sm:$0xff]  ;;  %v221_v3 = vadd.f32 %v213_v1, %v212_v0  ;;  %v215_v4 = vld [vmem:[%s182_s21 + $0x18] sm:$0xff]  ;;  %v216_v5 = vld [vmem:[%s182_s21 + $0x20] sm:$0xff]  ;;  %v619_v12 = vmax.f32 %v212_v0, %v213_v1  ;;  %1564 = vset.pattern.permute.xlu0 %v1687_v16  ;;  %1565 = vset.pattern.permute.xlu1 %v1687_v16  ;;  %v370_v19 = vunpack.c.l.s4 %v1688_v18  ;;  %vm209_vm0 = vcmask 253952   ;;  %s1431_s4 = sshll.u32 %s1674_s15, 4  ;;  %s203_s5 = scalar_lea.vmem [#allocation7], %s1826_s11 }
  0x3c   : > { %v217_v6 = vld [vmem:[%s182_s21 + $0x28] sm:$0xff]  ;;  %v218_v8 = vld [vmem:[%s182_s21 + $0x30] sm:$0xff]  ;;  %v219_v9 = vld [vmem:[%s182_s21 + $0x38] sm:$0xff]  ;;  %v224_v10 = vadd.f32 %v215_v4, %v214_v2  ;;  %v622_v13 = vmax.f32 %v214_v2, %v215_v4  ;;  %v1835_v20 = vshrl.u32 %v237_v17, 7  ;;  %vm1692_vm1 = vmmov 0   ;;  %s1338_s7 = sshll.u32 %s203_s5, 4  ;;  %s2028_s21 = scalar_lea.hbm %s2081_s3, %s1431_s4  ;;  %s2030_s7 = int_to_ptr.vmem [resolvable:$true] %s1338_s7 }
  0x3d   : > { %v227_v7 = vadd.f32 %v217_v6, %v216_v5  ;;  %222 = vadd.xlane.f32.xlu0 %v221_v3  ;;  %v230_v11 = vadd.f32 %v219_v9, %v218_v8  ;;  %v625_v14 = vmax.f32 %v216_v5, %v217_v6  ;;  %v628_v15 = vmax.f32 %v218_v8, %v219_v9  ;;  %s1326_s24 = scalar_lea.sflag [#allocation6], %s1826_s11  ;;  %s1600_s6 = scalar_lea.vmem %s2030_s7, 16 }
  0x3e   : > { %v371_v21 = vunpack.c.0.s8 %v370_v19  ;;  %v1838_v22 = vsub.s32 0, %v1835_v20  ;;  %v1841_v23 = vsub.s32 1, %v1835_v20  ;;  %v1844_v24 = vsub.s32 2, %v1835_v20  ;;  %p1601_p8 = scmp.ne.s32.totalorder %s2030_s7, %s1600_s6  ;;  %p2089_p9 = scmp.ne.s32.totalorder %s2085_s25, 0 }
  0x3f   : > { %228 = vadd.xlane.f32.xlu1 %v227_v7  ;;  %v1847_v25 = vsub.s32 3, %v1835_v20  ;;  %v1850_v26 = vsub.s32 4, %v1835_v20  ;;  %v1853_v27 = vsub.s32 5, %v1835_v20  ;;  %v1856_v28 = vsub.s32 6, %v1835_v20  ;;  %s1693_s15 = smov [#allocation7]  }
  0x40   : > { %v1859_v29 = vsub.s32 7, %v1835_v20  ;;  %v1862_v31 = vsub.s32 %v371_v21, %v1835_v20  ;;  %vm584_vm2 = vcmask 130112   ;;  %vm591_vm3 = vcmask 195712   ;;  %p1602_p11 = pnand %p1601_p8, %p2089_p9  ;;  %s1604_s8 = sshll.u32 %s1693_s15, 4  ;;  %s1605_s8 = int_to_ptr.vmem [resolvable:$false] %s1604_s8 }
  0x41   : > { %225 = vadd.xlane.f32.xlu0 %v224_v10  ;;  %vm598_vm4 = vcmask 261312   ;;  %vm1018_vm5 = vcmask 261120   ;;  %vm1171_vm6 = vcmask 1041408   ;;  %vm1167_vm7 = vcmask 15360   ;;  %s1606_s9 = scalar_lea.vmem %s1605_s8, 32  ;;  %p1607_p6 = scmp.lt.s32.totalorder %s2030_s7, %s1605_s8 }
  0x42   : > { %p1603_p0 = pneg %p1602_p11  ;;  %p1608_p13 = scmp.lt.s32.totalorder %s1606_s9, %s1600_s6 }
  0x43   : > { %231 = vadd.xlane.f32.xlu1 %v230_v11 }
  0x44   : > { %p1609_p2 = por %p1608_p13, %p1607_p6 }
  0x45   : > { %620 = vmax.xlane.f32.xlu0 %v619_v12 }
  0x46   : > { %p1610_p5 = pnand %p1609_p2, %p1603_p0 }
  0x47   : > { %623 = vmax.xlane.f32.xlu1 %v622_v13 }
  0x49   : > { %626 = vmax.xlane.f32.xlu0 %v625_v14 }
  0x4b   : > { %629 = vmax.xlane.f32.xlu1 %v628_v15 }
  0xca   : > { %v223_v30 = vpop.xlane.xlu0 %222 }
  0xcb   : > { %v240_v33 = vrot.slane %v223_v30, %v1838_v22  ;;  %v244_v34 = vrot.slane %v223_v30, %v1841_v23  ;;  %v248_v35 = vrot.slane %v223_v30, %v1844_v24  ;;  %v252_v36 = vrot.slane %v223_v30, %v1847_v25 }
  0xcc   : > { %v229_v32 = vpop.xlane.xlu1 %228  ;;  %v256_v37 = vrot.slane %v223_v30, %v1850_v26  ;;  %v260_v38 = vrot.slane %v223_v30, %v1853_v27  ;;  %v264_v39 = vrot.slane %v223_v30, %v1856_v28  ;;  %v268_v40 = vrot.slane %v223_v30, %v1859_v29 }
  0xcd   : > { %v365_v41 = vcombine.low %v240_v33, %v244_v34  ;;  %v366_v42 = vcombine.low %v248_v35, %v252_v36  ;;  %v304_v43 = vrot.slane %v229_v32, %v1838_v22  ;;  %v308_v44 = vrot.slane %v229_v32, %v1841_v23 }
  0xce   : > { %v226_v45 = vpop.xlane.xlu0 %225  ;;  %v367_v46 = vcombine.low %v256_v37, %v260_v38  ;;  %v368_v47 = vcombine.low %v264_v39, %v268_v40  ;;  %v312_v48 = vrot.slane %v229_v32, %v1844_v24  ;;  %v316_v49 = vrot.slane %v229_v32, %v1847_v25 }
  0xcf   : > { %v375_v50 = vrot.slane %v365_v41, %v1862_v31  ;;  %v382_v51 = vrot.slane %v366_v42, %v1862_v31  ;;  %v272_v52 = vrot.slane %v226_v45, %v1838_v22  ;;  %v276_v53 = vrot.slane %v226_v45, %v1841_v23 }
  0xd0   : > { %v389_v54 = vrot.slane %v367_v46, %v1862_v31  ;;  %v396_v55 = vrot.slane %v368_v47, %v1862_v31  ;;  %v280_v56 = vrot.slane %v226_v45, %v1844_v24  ;;  %v284_v57 = vrot.slane %v226_v45, %v1847_v25  ;;  %v232_v6 = vpop.xlane.xlu1 %231 }
  0xd1   : > { %v397_v58 = vcombine.low %v375_v50, %v382_v51  ;;  %v288_v59 = vrot.slane %v226_v45, %v1850_v26  ;;  %v292_v60 = vrot.slane %v226_v45, %v1853_v27  ;;  %v296_v61 = vrot.slane %v226_v45, %v1856_v28 }
  0xd2   : > { %v398_v62 = vcombine.low %v389_v54, %v396_v55  ;;  %v300_v63 = vrot.slane %v226_v45, %v1859_v29  ;;  %v414_v0 = vcombine.low %v272_v52, %v276_v53  ;;  %v415_v1 = vcombine.low %v280_v56, %v284_v57  ;;  %v621_v42 = vpop.xlane.xlu0 %620 }
  0xd3   : > { %v405_v2 = vrot.slane %v397_v58, %v1862_v31  ;;  %v416_v3 = vcombine.low %v288_v59, %v292_v60  ;;  %v320_v4 = vrot.slane %v229_v32, %v1850_v26  ;;  %v324_v5 = vrot.slane %v229_v32, %v1853_v27 }
  0xd4   : > { %v412_v7 = vrot.slane %v398_v62, %v1862_v31  ;;  %v417_v8 = vcombine.low %v296_v61, %v300_v63  ;;  %v424_v9 = vrot.slane %v414_v0, %v1862_v31  ;;  %v431_v10 = vrot.slane %v415_v1, %v1862_v31  ;;  %v624_v59 = vpop.xlane.xlu1 %623 }
  0xd5   : > { %v438_v11 = vrot.slane %v416_v3, %v1862_v31  ;;  %v328_v12 = vrot.slane %v229_v32, %v1856_v28  ;;  %v332_v13 = vrot.slane %v229_v32, %v1859_v29  ;;  %v463_v14 = vcombine.low %v304_v43, %v308_v44 }
  0xd6   : > { %v413_v15 = vcombine.low %v405_v2, %v412_v7  ;;  %v445_v16 = vrot.slane %v417_v8, %v1862_v31  ;;  %v446_v18 = vcombine.low %v424_v9, %v431_v10  ;;  %v464_v19 = vcombine.low %v312_v48, %v316_v49 }
  0xd7   : > { %v465_v21 = vcombine.low %v320_v4, %v324_v5  ;;  %v466_v30 = vcombine.low %v328_v12, %v332_v13  ;;  %v473_v33 = vrot.slane %v463_v14, %v1862_v31  ;;  %v336_v34 = vrot.slane %v232_v6, %v1838_v22 }
  0xd8   : > { %562 = vperm.xlu0 %1564, %v413_v15   ;;  %v447_v35 = vcombine.low %v438_v11, %v445_v16  ;;  %v454_v36 = vrot.slane %v446_v18, %v1862_v31  ;;  %v480_v37 = vrot.slane %v464_v19, %v1862_v31  ;;  %v340_v32 = vrot.slane %v232_v6, %v1841_v23 }
  0xd9   : > { %v487_v38 = vrot.slane %v465_v21, %v1862_v31  ;;  %v494_v39 = vrot.slane %v466_v30, %v1862_v31  ;;  %v344_v40 = vrot.slane %v232_v6, %v1844_v24  ;;  %v348_v41 = vrot.slane %v232_v6, %v1847_v25  ;;  %v627_v30 = vpop.xlane.xlu0 %626 }
  0xda   : > { %v461_v43 = vrot.slane %v447_v35, %v1862_v31  ;;  %v495_v44 = vcombine.low %v473_v33, %v480_v37  ;;  %v352_v45 = vrot.slane %v232_v6, %v1850_v26  ;;  %v356_v46 = vrot.slane %v232_v6, %v1853_v27 }
  0xdb   : > { %v496_v47 = vcombine.low %v487_v38, %v494_v39  ;;  %v360_v48 = vrot.slane %v232_v6, %v1856_v28  ;;  %v364_v49 = vrot.slane %v232_v6, %v1859_v29  ;;  %v512_v50 = vcombine.low %v336_v34, %v340_v32 }
  0xdc   : > { %v462_v51 = vcombine.low %v454_v36, %v461_v43  ;;  %v503_v52 = vrot.slane %v495_v44, %v1862_v31  ;;  %v513_v53 = vcombine.low %v344_v40, %v348_v41  ;;  %v514_v54 = vcombine.low %v352_v45, %v356_v46 }
  0xdd   : > { %v510_v55 = vrot.slane %v496_v47, %v1862_v31  ;;  %v515_v56 = vcombine.low %v360_v48, %v364_v49  ;;  %v522_v57 = vrot.slane %v512_v50, %v1862_v31  ;;  %v638_v58 = vrot.slane %v621_v42, %v1838_v22 }
  0xde   : > { %565 = vperm.xlu1 %1565, %v462_v51   ;;  %v529_v60 = vrot.slane %v513_v53, %v1862_v31  ;;  %v536_v61 = vrot.slane %v514_v54, %v1862_v31  ;;  %v642_v62 = vrot.slane %v621_v42, %v1841_v23  ;;  %v646_v63 = vrot.slane %v621_v42, %v1844_v24 }
  0xdf   : > { %v511_v0 = vcombine.low %v503_v52, %v510_v55  ;;  %v543_v1 = vrot.slane %v515_v56, %v1862_v31  ;;  %v650_v2 = vrot.slane %v621_v42, %v1847_v25  ;;  %v654_v3 = vrot.slane %v621_v42, %v1850_v26  ;;  %v630_v52 = vpop.xlane.xlu1 %629 }
  0xe0   : > { %v544_v4 = vcombine.low %v522_v57, %v529_v60  ;;  %v658_v5 = vrot.slane %v621_v42, %v1853_v27  ;;  %v662_v6 = vrot.slane %v621_v42, %v1856_v28  ;;  %v666_v7 = vrot.slane %v621_v42, %v1859_v29 }
  0xe1   : > { %v545_v8 = vcombine.low %v536_v61, %v543_v1  ;;  %v763_v9 = vcombine.low %v638_v58, %v642_v62  ;;  %v764_v10 = vcombine.low %v646_v63, %v650_v2  ;;  %v670_v11 = vrot.slane %v624_v59, %v1838_v22 }
  0xe2   : > { %568 = vperm.xlu1 %1565, %v511_v0   ;;  %v552_v12 = vrot.slane %v544_v4, %v1862_v31  ;;  %v765_v13 = vcombine.low %v654_v3, %v658_v5  ;;  %v766_v14 = vcombine.low %v662_v6, %v666_v7  ;;  %v674_v15 = vrot.slane %v624_v59, %v1841_v23 }
  0xe3   : > { %v559_v16 = vrot.slane %v545_v8, %v1862_v31  ;;  %v773_v18 = vrot.slane %v763_v9, %v1862_v31  ;;  %v780_v19 = vrot.slane %v764_v10, %v1862_v31  ;;  %v678_v21 = vrot.slane %v624_v59, %v1844_v24 }
  0xe4   : > { %v787_v33 = vrot.slane %v765_v13, %v1862_v31  ;;  %v794_v34 = vrot.slane %v766_v14, %v1862_v31  ;;  %v682_v35 = vrot.slane %v624_v59, %v1847_v25  ;;  %v686_v36 = vrot.slane %v624_v59, %v1850_v26 }
  0xe5   : > { %v560_v37 = vcombine.low %v552_v12, %v559_v16  ;;  %v795_v32 = vcombine.low %v773_v18, %v780_v19  ;;  %v690_v38 = vrot.slane %v624_v59, %v1853_v27  ;;  %v694_v39 = vrot.slane %v624_v59, %v1856_v28 }
  0xe6   : > { %v796_v40 = vcombine.low %v787_v33, %v794_v34  ;;  %v698_v41 = vrot.slane %v624_v59, %v1859_v29  ;;  %v812_v42 = vcombine.low %v670_v11, %v674_v15  ;;  %v813_v43 = vcombine.low %v678_v21, %v682_v35 }
  0xe7   : > { %571 = vperm.xlu1 %1565, %v560_v37   ;;  %v803_v44 = vrot.slane %v795_v32, %v1862_v31  ;;  %v814_v45 = vcombine.low %v686_v36, %v690_v38  ;;  %v702_v46 = vrot.slane %v627_v30, %v1838_v22  ;;  %v706_v47 = vrot.slane %v627_v30, %v1841_v23  ;;  %v1013_v37 = vld [vmem:[%s2079_s1] sm:$0xff]  ;;  %v1014_v32 = vld [vmem:[%s2079_s1 + $0x8] sm:$0xff] }
  0xe8   : > { %v810_v48 = vrot.slane %v796_v40, %v1862_v31  ;;  %v815_v49 = vcombine.low %v694_v39, %v698_v41  ;;  %v822_v50 = vrot.slane %v812_v42, %v1862_v31  ;;  %v829_v51 = vrot.slane %v813_v43, %v1862_v31 }
  0xe9   : > { %v836_v53 = vrot.slane %v814_v45, %v1862_v31  ;;  %v710_v54 = vrot.slane %v627_v30, %v1844_v24  ;;  %v714_v55 = vrot.slane %v627_v30, %v1847_v25  ;;  %v718_v56 = vrot.slane %v627_v30, %v1850_v26  ;;  %v1016_v45 = vld [vmem:[%s2079_s1 + $0x18] sm:$0xff] }
  0xea   : > { %v811_v57 = vcombine.low %v803_v44, %v810_v48  ;;  %v843_v58 = vrot.slane %v815_v49, %v1862_v31  ;;  %v844_v59 = vcombine.low %v822_v50, %v829_v51  ;;  %v722_v60 = vrot.slane %v627_v30, %v1853_v27  ;;  %v1015_v44 = vld [vmem:[%s2079_s1 + $0x10] sm:$0xff] }
  0xeb   : > { %v726_v61 = vrot.slane %v627_v30, %v1856_v28  ;;  %v730_v62 = vrot.slane %v627_v30, %v1859_v29  ;;  %v861_v63 = vcombine.low %v702_v46, %v706_v47  ;;  %v862_v0 = vcombine.low %v710_v54, %v714_v55 }
  0xec   : > { %960 = vperm.xlu1 %1565, %v811_v57   ;;  %v845_v1 = vcombine.low %v836_v53, %v843_v58  ;;  %v852_v2 = vrot.slane %v844_v59, %v1862_v31  ;;  %v863_v3 = vcombine.low %v718_v56, %v722_v60  ;;  %v734_v4 = vrot.slane %v630_v52, %v1838_v22 }
  0xed   : > { %v864_v5 = vcombine.low %v726_v61, %v730_v62  ;;  %v871_v6 = vrot.slane %v861_v63, %v1862_v31  ;;  %v878_v7 = vrot.slane %v862_v0, %v1862_v31  ;;  %v738_v8 = vrot.slane %v630_v52, %v1841_v23 }
  0xee   : > { %v859_v9 = vrot.slane %v845_v1, %v1862_v31  ;;  %v885_v10 = vrot.slane %v863_v3, %v1862_v31  ;;  %v742_v11 = vrot.slane %v630_v52, %v1844_v24  ;;  %v746_v12 = vrot.slane %v630_v52, %v1847_v25 }
  0xef   : > { %v892_v13 = vrot.slane %v864_v5, %v1862_v31  ;;  %v893_v14 = vcombine.low %v871_v6, %v878_v7  ;;  %v750_v22 = vrot.slane %v630_v52, %v1850_v26  ;;  %v754_v15 = vrot.slane %v630_v52, %v1853_v27 }
  0xf0   : > { %v860_v16 = vcombine.low %v852_v2, %v859_v9  ;;  %v758_v18 = vrot.slane %v630_v52, %v1856_v28  ;;  %v762_v23 = vrot.slane %v630_v52, %v1859_v29  ;;  %v910_v19 = vcombine.low %v734_v4, %v738_v8 }
  0xf1   : > { %v894_v21 = vcombine.low %v885_v10, %v892_v13  ;;  %v901_v30 = vrot.slane %v893_v14, %v1862_v31  ;;  %v911_v33 = vcombine.low %v742_v11, %v746_v12  ;;  %v912_v24 = vcombine.low %v750_v22, %v754_v15 }
  0xf2   : > { %963 = vperm.xlu1 %1565, %v860_v16   ;;  %v913_v25 = vcombine.low %v758_v18, %v762_v23  ;;  %v920_v34 = vrot.slane %v910_v19, %v1862_v31  ;;  %v1689_v39 = vmov 0.0   ;;  %v1690_v41 = vmov 0.0|0.0  }
  0xf3   : > { %v908_v35 = vrot.slane %v894_v21, %v1862_v31  ;;  %v927_v26 = vrot.slane %v911_v33, %v1862_v31  ;;  %v934_v27 = vrot.slane %v912_v24, %v1862_v31  ;;  %210 = vst.msk [vmem:[#allocation2] sm:$0x1] %vm209_vm0, %v1689_v39  ;;  %1481 = vmatprep.subr.bf16.mxu0 %v1690_v41  ;;  %v1691_v47 = vmov -inf   ;;  %v1017_v24 = vld [vmem:[%s2080_s2] sm:$0x3] }
  0xf4   : > { %v941_v28 = vrot.slane %v913_v25, %v1862_v31  ;;  %v1482_v42 = vpack.c.bf16 %v1014_v32, %v1013_v37  ;;  %1487 = vmatprep.subr.bf16.mxu1 %v1690_v41  ;;  %211 = vst.msk [vmem:[#allocation3] sm:$0x1] %vm209_vm0, %v1691_v47  ;;  %v1485_v48 = vpack.c.bf16 %v1016_v45, %v1015_v44  ;;  %v574_v49 = vand.u32 127, %v237_v17 }
  0xf5   : > { %v909_v29 = vcombine.low %v901_v30, %v908_v35  ;;  %v942_v36 = vcombine.low %v920_v34, %v927_v26  ;;  %1457 = vmatprep.mubr.msk.f32.mxu0 %vm1692_vm1, %v1689_v39  ;;  %1468 = vmatprep.mubr.msk.f32.mxu1 %vm1692_vm1, %v1689_v39 }
  0xf6   : > { %v943_v38 = vcombine.low %v934_v27, %v941_v28  ;;  %1483 = vmatpush3.bf16.msra.mxu0 %v1482_v42  ;;  %1489 = vmatpush3.bf16.msra.mxu1 %v1482_v42  ;;  %v579_v50 = vadd.s32 4294967288, %v574_v49  ;;  %v586_v51 = vadd.s32 4294967280, %v574_v49  ;;  %v593_v54 = vadd.s32 4294967272, %v574_v49 }
  0xf7   : > { %966 = vperm.xlu1 %1565, %v909_v29   ;;  %v950_v40 = vrot.slane %v942_v36, %v1862_v31  ;;  %1484 = vmatprep.subr.bf16.mxu0 %v1690_v41  ;;  %v577_v56 = vsub.s32 %v574_v49, %v1835_v20 }
  0xf8   : > { %v957_v43 = vrot.slane %v943_v38, %v1862_v31  ;;  %1490 = vmatprep.subr.bf16.mxu1 %v1690_v41  ;;  %v582_v53 = vsub.s32 %v579_v50, %v1835_v20  ;;  %v589_v55 = vsub.s32 %v586_v51, %v1835_v20  ;;  %v596_v60 = vsub.s32 %v593_v54, %v1835_v20 }
  0xfa   : > { %v958_v46 = vcombine.low %v950_v40, %v957_v43  ;;  %1486 = vmatpush3.bf16.msra.mxu0 %v1485_v48  ;;  %1492 = vmatpush3.bf16.msra.mxu1 %v1485_v48  ;;  %v220_v4 = vld [vmem:[#allocation2] sm:$0x1] }
  0xfb   : > { %1476 = vmatprep.subr.mxu0 %v1689_v39  ;;  %1471 = vmatprep.subr.mxu1 %v1689_v39  ;;  %v618_v19 = vld [vmem:[#allocation3] sm:$0x1] }
  0xfc   : > { %969 = vperm.xlu1 %1565, %v958_v46  }
 0x157   : > { %v563_v58 = vpop.permute.xlu0 %562 }
 0x158   : > { %v578_v62 = vrot.slane %v563_v58, %v577_v56 }
 0x15d   : > { %v566_v52 = vpop.permute.xlu1 %565 }
 0x15e   : > { %v583_v59 = vrot.slane %v566_v52, %v582_v53 }
 0x160   : > { %v585_v63 = vsel %vm584_vm2, %v583_v59, %v578_v62 }
 0x161   : > { %v569_v57 = vpop.permute.xlu1 %568 }
 0x162   : > { %v590_v61 = vrot.slane %v569_v57, %v589_v55 }
 0x164   : > { %v592_v1 = vsel %vm591_vm3, %v590_v61, %v585_v63 }
 0x166   : > { %v572_v17 = vpop.permute.xlu1 %571 }
 0x167   : > { %v597_v0 = vrot.slane %v572_v17, %v596_v60 }
 0x169   : > { %v599_v2 = vsel %vm598_vm4, %v597_v0, %v592_v1 }
 0x16a   : > { %v606_v3 = vrot.slane %v599_v2, %v1862_v31 }
 0x16b   : > { %v961_v5 = vpop.permute.xlu1 %960 }
 0x16c   : > { %v613_v6 = vrot.slane %v606_v3, %v1862_v31  ;;  %v974_v13 = vrot.slane %v961_v5, %v577_v56 }
 0x16e   : > { %v615_v20 = vadd.f32 %v613_v6, %v220_v4 }
 0x170   : > { %617 = vst.msk [vmem:[#allocation2] sm:$0x1] %vm209_vm0, %v615_v20 }
 0x171   : > { %v964_v7 = vpop.permute.xlu1 %963 }
 0x172   : > { %v978_v10 = vrot.slane %v964_v7, %v582_v53 }
 0x174   : > { %v979_v22 = vsel %vm584_vm2, %v978_v10, %v974_v13 }
 0x176   : > { %v967_v8 = vpop.permute.xlu1 %966 }
 0x177   : > { %v1010_v9 = vld [vmem:[#allocation2] sm:$0x1]  ;;  %v983_v12 = vrot.slane %v967_v8, %v589_v55 }
 0x178   : > { %v1011_v11 = vmul.f32 0.00390625, %v1010_v9 }
 0x179   : > { %v984_v16 = vsel %vm591_vm3, %v983_v12, %v979_v22 }
 0x17a   : > { %1458 = vmatmul.mubr.msk.f32.vlgmr.msra.gmra.mrb[0].mxu0 %vm1018_vm5, %v1011_v11 }
 0x17b   : > { %v970_v14 = vpop.permute.xlu1 %969  ;;  %1478 = vmatprep.mubr.msk.f32.mxu0 %vm1692_vm1, %v1689_v39  ;;  %1477 = vmatpush3.msk.msra.mxu0 %vm1171_vm6, %v1017_v24 }
 0x17c   : > { %v988_v15 = vrot.slane %v970_v14, %v596_v60 }
 0x17e   : > { %v989_v18 = vsel %vm598_vm4, %v988_v15, %v984_v16 }
 0x17f   : > { %v996_v23 = vrot.slane %v989_v18, %v1862_v31 }
 0x181   : > { %v1003_v21 = vrot.slane %v996_v23, %v1862_v31 }
 0x183   : > { %v1005_v30 = vmax.f32 %v618_v19, %v1003_v21 }
 0x185   : > { %1006 = vst.msk [vmem:[#allocation3] sm:$0x1] %vm209_vm0, %v1005_v30 }
 0x18c   : > { %v1012_v33 = vld [vmem:[#allocation3] sm:$0x1] }
 0x18d   : > { %1469 = vmatmul.mubr.msk.f32.vlgmr.msra.gmra.mrb[0].mxu1 %vm1018_vm5, %v1012_v33 }
 0x18e   : > { %1473 = vmatprep.mubr.msk.f32.mxu1 %vm1692_vm1, %v1689_v39  ;;  %1472 = vmatpush3.msk.msra.mxu1 %vm1171_vm6, %v1017_v24 }
 0x24d   : > { %v1088_v25 = vpop.f32.mrb[0].mxu0 }
 0x24e   : > { %v1092_v34 = vmax.f32 %v1088_v25, 0.0  ;;  %v1459_v31 = vpop.f32.mrb[1].mxu0 }
 0x250   : > { %1479 = vmatmul.mubr.msk.f32.vlgmr.msra.gmra.mrb[2].mxu0 %vm1167_vm7, %v1092_v34 }
 0x260   : > { %v1162_v35 = vpop.f32.mrb[0].mxu1 }
 0x261   : > { %v1166_v26 = vmax.f32 %v1162_v35, 0.0  ;;  %v1470_v27 = vpop.f32.mrb[1].mxu1 }
 0x263   : > { %1474 = vmatmul.mubr.msk.f32.vlgmr.msra.gmra.mrb[2].mxu1 %vm1167_vm7, %v1166_v26 }
 0x323   : > { %v1314_v28 = vpop.f32.mrb[2].mxu0 }
 0x324   : > { %v1480_v29 = vpop.f32.mrb[3].mxu0 }
 0x336   : > { %v1241_v36 = vpop.f32.mrb[2].mxu1 }
 0x337   : > { %v1315_v37 = vadd.f32 %v1314_v28, %v1241_v36  ;;  %v1475_v32 = vpop.f32.mrb[3].mxu1 }
 0x339   : > { %v1430_v38 = vmul.f32 -1.442695, %v1315_v37 }
 0x33b   : > { %1566 = vpow2.f32 %v1430_v38 }
 0x345   : > { %v1567_v39 = vpop.eup %1566 }
 0x346   : > { %v1321_v40 = vadd.f32 1.0, %v1567_v39 }
 0x348   : > { %1568 = vrcp.f32 %v1321_v40 }
 0x352   : > { %v1569_v41 = vpop.eup %1568 }
 0x353   : > { %1324 = vst.msk [vmem:[%s203_s5] sm:$0x1] %vm209_vm0, %v1569_v41 }
 0x354   : > { %1613 = shalt.err (!%p1610_p5)
}
 0x355   : > { %s1614_s11 = scalar_lea.hbm %s2028_s21, 16  ;;  %s1618_s23 = scalar_lea.hbm %s2081_s3, 32 }
 0x356   : > { %p1615_p4 = scmp.ne.s32.totalorder %s2028_s21, %s1614_s11  ;;  %p1619_p12 = scmp.lt.u32.totalorder %s2028_s21, %s2081_s3 }
 0x357   : > { %p1620_p1 = scmp.lt.u32.totalorder %s1618_s23, %s1614_s11  ;;  %p1622_p8 = scmp.lt.u32.totalorder %s1614_s11, %s2028_s21 }
 0x358   : > { %p1616_p7 = pnand %p1615_p4, %p2089_p9 }
 0x359   : > { %p1621_p3 = por %p1620_p1, %p1619_p12 }
 0x35a   : > { %p1617_p10 = pneg %p1616_p7 }
 0x35b   : > { %p1623_p11 = por %p1622_p8, %p1621_p3 }
 0x35d   : > { %p1624_p0 = pnand %p1623_p11, %p1617_p10 }
 0x35f   : > { %1627 = shalt.err (!%p1624_p0)
}
 0x360   : > { %1496 = dma.vmem_to_hbm [thread:$0]  (%p2089_p9), %s2030_s7, 16, %s2028_s21, %s1326_s24  }
 0x361 PF: > { %s1350_s30 = sand.u32 1, %s1662_s12   ;;  %p2090_p6 = scmp.ne.s32.totalorder %s2086_s27, 0 }
 0x362   : > { %p2091_p13 = scmp.ge.s32.totalorder %s1682_s17, 2  ;;  %s1351_s4 = scalar_lea.sflag [#allocation6], %s1350_s30 }
 0x364   : > { %p1503_p2 = pnand %p2091_p13, %p2090_p6 }
 0x366   : > { %1657 = dma.done.wait (!%p1503_p2), %s1351_s4, 16  }
 0x367   : > { %1659 = vsyncadd (!%p1503_p2), %s1351_s4, 4294967280  ;;  %s19_s17 = sadd.s32 1, %s1682_s17   ;;  %s2092_s12 = smov %s1666_s13 }
 0x368   : > { %p16_p5 = scmp.ge.s32.totalorder %s19_s17, 4   ;;  %s2093_s13 = smov %s1670_s14 }
 0x369   : > { %s2094_s14 = smov %s1770_s26  ;;  %s2095_s15 = smov %s1678_s16 }
 0x36a   : > { %s2096_s16 = smov %s2098_s20  ;;  %18 = sbr.rel (!%p16_p5) target bundleno = 6 (0x6), region = 85 }
 0x371   :  { %1355 = vsyncpa [#allocation5], 1 }
 0x372   :  { %1357 = vsyncpa [#allocation5 + $0x1], 1 }
 0x373   :  { %1358 = vsyncpa [#allocation6], 1 }
 0x374   :  { %1360 = vsyncpa [#allocation6 + $0x1], 1 }

</bundles_post_ra>
